<compile_context>
chip_gen: v5e
topology: v5e:2x2
jax: 0.10.0
libtpu: 0.0.40
codegen_flags: <defaults>
</compile_context>

<pallas_src>
import math

import jax
import jax.numpy as jnp
from jax import lax
from jax.experimental import pallas as pl
from jax.experimental.pallas import tpu as pltpu


# -------------------- tiling helper --------------------

def _choose_q_tile(seq_len, max_tile=256):
    """Largest query tile <= max_tile that divides seq_len (multiple of 8), else full seq."""
    if seq_len <= max_tile:
        return seq_len
    t = max_tile
    while t >= 8:
        if seq_len % t == 0:
            return t
        t -= 8
    return seq_len


# -------------------- fused attention-layer kernel --------------------

def _fused_attention_kernel(xq_ref, xk_ref, xv_ref,
                            wq_ref, bq_ref, wk_ref, bk_ref, wv_ref, bv_ref,
                            wo_ref, bo_ref,
                            out_ref, attn_ref):
    """One grid step = (batch b, query block qi, head h).

    Fuses the per-head Q/K/V projections, scaled-dot-product softmax attention, and this
    head's contribution to the output projection. The output block index is constant along
    the last ("arbitrary") grid axis h, so out_ref stays VMEM-resident and is accumulated
    across heads (init at h == 0, writeback when the (b, qi) block changes).
    """
    h = pl.program_id(2)
    cdt = wq_ref.dtype                      # bf16 compute dtype for MXU operands

    xq = xq_ref[0].astype(cdt)              # (tq, d_model)
    xk = xk_ref[0].astype(cdt)              # (S,  d_model)
    xv = xv_ref[0].astype(cdt)              # (S,  d_model)

    # Per-head projections; the softmax scale 1/sqrt(dk) is pre-folded into wq/bq.
    q = jnp.dot(xq, wq_ref[0], preferred_element_type=jnp.float32) + bq_ref[0]   # (tq, dk)
    k = jnp.dot(xk, wk_ref[0], preferred_element_type=jnp.float32) + bk_ref[0]   # (S,  dk)
    v = jnp.dot(xv, wv_ref[0], preferred_element_type=jnp.float32) + bv_ref[0]   # (S,  dv)

    # scores = Q @ K^T with the transpose folded into dot_general dimension numbers.
    s = lax.dot_general(q.astype(cdt), k.astype(cdt),
                        (((1,), (1,)), ((), ())),
                        preferred_element_type=jnp.float32)                      # (tq, S)

    # Numerically stable softmax in f32; exact reciprocal so attention rows sum to 1.
    m = jnp.max(s, axis=-1, keepdims=True)
    p = jnp.exp(s - m)
    denom = jnp.sum(p, axis=-1, keepdims=True)
    a = p * pl.reciprocal(denom, approx=False)

    attn_ref[0, 0] = a.astype(attn_ref.dtype)

    o = jnp.dot(a.astype(cdt), v.astype(cdt),
                preferred_element_type=jnp.float32)                               # (tq, dv)
    # This head's slice of the output projection: o_h @ Wo[h*dv:(h+1)*dv, :].
    contrib = jnp.dot(o.astype(cdt), wo_ref[0],
                      preferred_element_type=jnp.float32)                         # (tq, d_model)

    @pl.when(h == 0)
    def _():
        out_ref[0] = (contrib + bo_ref[...]).astype(out_ref.dtype)

    @pl.when(h > 0)
    def _():
        out_ref[0] = out_ref[0] + contrib.astype(out_ref.dtype)


# -------------------- parameter preparation (one-time, static) --------------------

def prepare_params(params, n_heads, compute_dtype=jnp.bfloat16):
    """Repack raw [in, out] weights into per-head tiles and fold the softmax scale into Wq/bq.

    wq/wk: (d_model, H*dk) -> (H, d_model, dk)   [bf16, MXU operand]
    wv:    (d_model, H*dv) -> (H, d_model, dv)   [bf16]
    wo:    (H*dv, d_model) -> (H, dv, d_model)   [bf16]
    biases stay float32 (added to the f32 accumulators).
    """
    H = n_heads
    wq, bq = params["wq"], params["bq"]
    wk, bk = params["wk"], params["bk"]
    wv, bv = params["wv"], params["bv"]
    wo, bo = params["wo"], params["bo"]
    d_model = wq.shape[0]
    dk = wq.shape[1] // H
    dv = wv.shape[1] // H
    scale = 1.0 / math.sqrt(dk)

    wq_h = jnp.transpose((wq * scale).reshape(d_model, H, dk), (1, 0, 2)).astype(compute_dtype)
    wk_h = jnp.transpose(wk.reshape(d_model, H, dk), (1, 0, 2)).astype(compute_dtype)
    wv_h = jnp.transpose(wv.reshape(d_model, H, dv), (1, 0, 2)).astype(compute_dtype)
    wo_h = wo.reshape(H, dv, d_model).astype(compute_dtype)

    bq_h = (bq * scale).reshape(H, 1, dk).astype(jnp.float32)
    bk_h = bk.reshape(H, 1, dk).astype(jnp.float32)
    bv_h = bv.reshape(H, 1, dv).astype(jnp.float32)
    bo_2d = bo.reshape(1, d_model).astype(jnp.float32)

    return {"H": H, "dk": dk, "dv": dv, "d_model": d_model,
            "wq": wq_h, "bq": bq_h, "wk": wk_h, "bk": bk_h,
            "wv": wv_h, "bv": bv_h, "wo": wo_h, "bo": bo_2d}


# -------------------- AttentionLayer forward --------------------

def attention_layer_forward(prep, queries, keys, values, attn_dtype=jnp.float32):
    """Mirrors AttentionLayer.forward (mix=False, FullAttention, no mask/dropout,
    output_attention=True).

    queries: (B, L, d_model), keys/values: (B, S, d_model)
    returns: (out: (B, L, d_model) float32, attn: (B, H, L, S) attn_dtype)

    attn_dtype=jnp.bfloat16 halves the dominant attention-weight HBM writeback (largest
    relative win on v5e); default float32 matches the PyTorch module's dtype.
    """
    B, L, d_model = queries.shape
    S = keys.shape[1]
    assert keys.shape == (B, S, d_model) and values.shape == (B, S, d_model)
    H, dk, dv = prep["H"], prep["dk"], prep["dv"]

    tq = _choose_q_tile(L)
    nq = L // tq
    grid = (B, nq, H)

    out, attn = pl.pallas_call(
        _fused_attention_kernel,
        grid=grid,
        out_shape=(
            jax.ShapeDtypeStruct((B, L, d_model), jnp.float32),
            jax.ShapeDtypeStruct((B, H, L, S), attn_dtype),
        ),
        in_specs=[
            pl.BlockSpec((1, tq, d_model), lambda b, qi, h: (b, qi, 0)),   # queries block
            pl.BlockSpec((1, S, d_model), lambda b, qi, h: (b, 0, 0)),     # keys (full S)
            pl.BlockSpec((1, S, d_model), lambda b, qi, h: (b, 0, 0)),     # values (full S)
            pl.BlockSpec((1, d_model, dk), lambda b, qi, h: (h, 0, 0)),    # wq (scale folded)
            pl.BlockSpec((1, 1, dk), lambda b, qi, h: (h, 0, 0)),          # bq (scale folded)
            pl.BlockSpec((1, d_model, dk), lambda b, qi, h: (h, 0, 0)),    # wk
            pl.BlockSpec((1, 1, dk), lambda b, qi, h: (h, 0, 0)),          # bk
            pl.BlockSpec((1, d_model, dv), lambda b, qi, h: (h, 0, 0)),    # wv
            pl.BlockSpec((1, 1, dv), lambda b, qi, h: (h, 0, 0)),          # bv
            pl.BlockSpec((1, dv, d_model), lambda b, qi, h: (h, 0, 0)),    # wo head slice
            pl.BlockSpec((1, d_model), lambda b, qi, h: (0, 0)),           # bo
        ],
        out_specs=(
            pl.BlockSpec((1, tq, d_model), lambda b, qi, h: (b, qi, 0)),   # out (acc over h)
            pl.BlockSpec((1, 1, tq, S), lambda b, qi, h: (b, h, qi, 0)),   # attention weights
        ),
        compiler_params=pltpu.CompilerParams(
            dimension_semantics=("parallel", "parallel", "arbitrary"),
            vmem_limit_bytes=48 * 1024 * 1024,
        ),
    )(queries, keys, values,
      prep["wq"], prep["bq"], prep["wk"], prep["bk"],
      prep["wv"], prep["bv"], prep["wo"], prep["bo"])
    return out, attn


# -------------------- reference (plain JAX, float32) for sanity check --------------------

def reference_forward(params, queries, keys, values, n_heads):
    B, L, d_model = queries.shape
    S = keys.shape[1]
    H = n_heads
    dk = params["wq"].shape[1] // H
    dv = params["wv"].shape[1] // H
    q = (queries @ params["wq"] + params["bq"]).reshape(B, L, H, dk)
    k = (keys @ params["wk"] + params["bk"]).reshape(B, S, H, dk)
    v = (values @ params["wv"] + params["bv"]).reshape(B, S, H, dv)
    scale = 1.0 / math.sqrt(dk)
    scores = jnp.einsum("blhe,bshe->bhls", q, k)
    a = jax.nn.softmax(scale * scores, axis=-1)
    out = jnp.einsum("bhls,bshd->blhd", a, v).reshape(B, L, H * dv)
    out = out @ params["wo"] + params["bo"]
    return out, a


# -------------------- main --------------------

if __name__ == "__main__":
    B, L, S = 2, 8, 16
    d_model, n_heads = 32, 4        # d_keys = d_values = d_model // n_heads = 8

    key = jax.random.PRNGKey(0)
    ks = jax.random.split(key, 12)

    dk = d_model // n_heads
    dv = d_model // n_heads

    # Deterministic parameter init (weights stored as [in_features, out_features]).
    def init_w(k, fan_in, fan_out):
        lim = 1.0 / math.sqrt(fan_in)
        return jax.random.uniform(k, (fan_in, fan_out), jnp.float32, -lim, lim)

    def init_b(k, fan_in, fan_out):
        lim = 1.0 / math.sqrt(fan_in)
        return jax.random.uniform(k, (fan_out,), jnp.float32, -lim, lim)

    params = {
        "wq": init_w(ks[0], d_model, dk * n_heads), "bq": init_b(ks[1], d_model, dk * n_heads),
        "wk": init_w(ks[2], d_model, dk * n_heads), "bk": init_b(ks[3], d_model, dk * n_heads),
        "wv": init_w(ks[4], d_model, dv * n_heads), "bv": init_b(ks[5], d_model, dv * n_heads),
        "wo": init_w(ks[6], dv * n_heads, d_model), "bo": init_b(ks[7], dv * n_heads, d_model),
    }

    prep = prepare_params(params, n_heads)

    # Tolerances account for bf16 MXU operands (f32 accumulation) vs. an all-f32 reference.
    ATOL, RTOL = 2e-2, 2e-2

    # --- case 1: cross-attention (distinct queries/keys/values, L != S) ---
    queries = jax.random.normal(ks[8], (B, L, d_model), jnp.float32)
    keys_in = jax.random.normal(ks[9], (B, S, d_model), jnp.float32)
    values_in = jax.random.normal(ks[10], (B, S, d_model), jnp.float32)

    out, attn = attention_layer_forward(prep, queries, keys_in, values_in)
    out = jax.block_until_ready(out)
    attn = jax.block_until_ready(attn)

    ref_out, ref_attn = reference_forward(params, queries, keys_in, values_in, n_heads)
    assert out.shape == (B, L, d_model)
    assert attn.shape == (B, n_heads, L, S)
    assert jnp.allclose(out, ref_out, atol=ATOL, rtol=RTOL)
    assert jnp.allclose(attn, ref_attn, atol=ATOL, rtol=RTOL)

    # --- case 2: self-attention (same tensor passed three times; single code path,
    #             no Python-identity dispatch, works identically under jit) ---
    x = jax.random.normal(ks[11], (B, L, d_model), jnp.float32)
    out2, attn2 = attention_layer_forward(prep, x, x, x)
    out2 = jax.block_until_ready(out2)
    attn2 = jax.block_until_ready(attn2)

    ref_out2, ref_attn2 = reference_forward(params, x, x, x, n_heads)
    assert out2.shape == (B, L, d_model)
    assert attn2.shape == (B, n_heads, L, L)
    assert jnp.allclose(out2, ref_out2, atol=ATOL, rtol=RTOL)
    assert jnp.allclose(attn2, ref_attn2, atol=ATOL, rtol=RTOL)

    print("KERNEL_OK")
</pallas_src>

<mosaic_0001>
module attributes {stable_mosaic.version = 11 : i64} {
  func.func @_fused_attention_kernel(%arg0: i32, %arg1: i32, %arg2: i32, %arg3: memref<1x8x32xf32, #tpu.memory_space<vmem>>, %arg4: memref<1x16x32xf32, #tpu.memory_space<vmem>>, %arg5: memref<1x16x32xf32, #tpu.memory_space<vmem>>, %arg6: memref<1x32x8xbf16, #tpu.memory_space<vmem>>, %arg7: memref<1x1x8xf32, #tpu.memory_space<vmem>>, %arg8: memref<1x32x8xbf16, #tpu.memory_space<vmem>>, %arg9: memref<1x1x8xf32, #tpu.memory_space<vmem>>, %arg10: memref<1x32x8xbf16, #tpu.memory_space<vmem>>, %arg11: memref<1x1x8xf32, #tpu.memory_space<vmem>>, %arg12: memref<1x8x32xbf16, #tpu.memory_space<vmem>>, %arg13: memref<1x32xf32, #tpu.memory_space<vmem>>, %arg14: memref<1x8x32xf32, #tpu.memory_space<vmem>>, %arg15: memref<1x1x8x16xf32, #tpu.memory_space<vmem>>) attributes {dimension_semantics = [#tpu.dimension_semantics<parallel>, #tpu.dimension_semantics<parallel>, #tpu.dimension_semantics<arbitrary>], iteration_bounds = array<i64: 2, 1, 4>, scalar_prefetch = 0 : i64, scratch_operands = 0 : i64, tpu.core_type = #tpu.core_type<tc>, window_params = [{transform_indices = @transform_0, window_bounds = array<i64: 1, 8, 32>}, {transform_indices = @transform_1, window_bounds = array<i64: 1, 16, 32>}, {transform_indices = @transform_2, window_bounds = array<i64: 1, 16, 32>}, {transform_indices = @transform_3, window_bounds = array<i64: 1, 32, 8>}, {transform_indices = @transform_4, window_bounds = array<i64: 1, 1, 8>}, {transform_indices = @transform_5, window_bounds = array<i64: 1, 32, 8>}, {transform_indices = @transform_6, window_bounds = array<i64: 1, 1, 8>}, {transform_indices = @transform_7, window_bounds = array<i64: 1, 32, 8>}, {transform_indices = @transform_8, window_bounds = array<i64: 1, 1, 8>}, {transform_indices = @transform_9, window_bounds = array<i64: 1, 8, 32>}, {pipeline_mode = #tpu.pipeline_mode<synchronous>, transform_indices = @transform_10, window_bounds = array<i64: 1, 32>}, {transform_indices = @transform_11, window_bounds = array<i64: 1, 8, 32>}, {transform_indices = @transform_12, window_bounds = array<i64: 1, 1, 8, 16>}]} {
    %c0 = arith.constant 0 : index
    %c0_0 = arith.constant 0 : index
    %c0_1 = arith.constant 0 : index
    %0 = vector.load %arg3[%c0, %c0_0, %c0_1] : memref<1x8x32xf32, #tpu.memory_space<vmem>>, vector<1x8x32xf32>
    %1 = vector.shape_cast %0 : vector<1x8x32xf32> to vector<8x32xf32>
    %2 = arith.truncf %1 : vector<8x32xf32> to vector<8x32xbf16>
    %c0_2 = arith.constant 0 : index
    %c0_3 = arith.constant 0 : index
    %c0_4 = arith.constant 0 : index
    %3 = vector.load %arg4[%c0_2, %c0_3, %c0_4] : memref<1x16x32xf32, #tpu.memory_space<vmem>>, vector<1x16x32xf32>
    %4 = vector.shape_cast %3 : vector<1x16x32xf32> to vector<16x32xf32>
    %5 = arith.truncf %4 : vector<16x32xf32> to vector<16x32xbf16>
    %c0_5 = arith.constant 0 : index
    %c0_6 = arith.constant 0 : index
    %c0_7 = arith.constant 0 : index
    %6 = vector.load %arg5[%c0_5, %c0_6, %c0_7] : memref<1x16x32xf32, #tpu.memory_space<vmem>>, vector<1x16x32xf32>
    %7 = vector.shape_cast %6 : vector<1x16x32xf32> to vector<16x32xf32>
    %8 = arith.truncf %7 : vector<16x32xf32> to vector<16x32xbf16>
    %c0_8 = arith.constant 0 : index
    %c0_9 = arith.constant 0 : index
    %c0_10 = arith.constant 0 : index
    %9 = vector.load %arg6[%c0_8, %c0_9, %c0_10] : memref<1x32x8xbf16, #tpu.memory_space<vmem>>, vector<1x32x8xbf16>
    %10 = vector.shape_cast %9 : vector<1x32x8xbf16> to vector<32x8xbf16>
    %cst = arith.constant dense<0.000000e+00> : vector<8x8xf32>
    %11 = tpu.matmul %2, %10, %cst {dimension_numbers = #tpu.dot_dimension_numbers<[1], [0], [0], [1], [0, 0, 1, 1], [], []>} : vector<8x32xbf16>, vector<32x8xbf16>, vector<8x8xf32> -> vector<8x8xf32>
    %c0_11 = arith.constant 0 : index
    %c0_12 = arith.constant 0 : index
    %c0_13 = arith.constant 0 : index
    %12 = vector.load %arg7[%c0_11, %c0_12, %c0_13] : memref<1x1x8xf32, #tpu.memory_space<vmem>>, vector<1x1x8xf32>
    %13 = vector.shape_cast %12 : vector<1x1x8xf32> to vector<1x8xf32>
    %14 = vector.broadcast %13 : vector<1x8xf32> to vector<8x8xf32>
    %15 = arith.addf %11, %14 : vector<8x8xf32>
    %c0_14 = arith.constant 0 : index
    %c0_15 = arith.constant 0 : index
    %c0_16 = arith.constant 0 : index
    %16 = vector.load %arg8[%c0_14, %c0_15, %c0_16] : memref<1x32x8xbf16, #tpu.memory_space<vmem>>, vector<1x32x8xbf16>
    %17 = vector.shape_cast %16 : vector<1x32x8xbf16> to vector<32x8xbf16>
    %cst_17 = arith.constant dense<0.000000e+00> : vector<16x8xf32>
    %18 = tpu.matmul %5, %17, %cst_17 {dimension_numbers = #tpu.dot_dimension_numbers<[1], [0], [0], [1], [0, 0, 1, 1], [], []>} : vector<16x32xbf16>, vector<32x8xbf16>, vector<16x8xf32> -> vector<16x8xf32>
    %c0_18 = arith.constant 0 : index
    %c0_19 = arith.constant 0 : index
    %c0_20 = arith.constant 0 : index
    %19 = vector.load %arg9[%c0_18, %c0_19, %c0_20] : memref<1x1x8xf32, #tpu.memory_space<vmem>>, vector<1x1x8xf32>
    %20 = vector.shape_cast %19 : vector<1x1x8xf32> to vector<1x8xf32>
    %21 = vector.broadcast %20 : vector<1x8xf32> to vector<16x8xf32>
    %22 = arith.addf %18, %21 : vector<16x8xf32>
    %c0_21 = arith.constant 0 : index
    %c0_22 = arith.constant 0 : index
    %c0_23 = arith.constant 0 : index
    %23 = vector.load %arg10[%c0_21, %c0_22, %c0_23] : memref<1x32x8xbf16, #tpu.memory_space<vmem>>, vector<1x32x8xbf16>
    %24 = vector.shape_cast %23 : vector<1x32x8xbf16> to vector<32x8xbf16>
    %cst_24 = arith.constant dense<0.000000e+00> : vector<16x8xf32>
    %25 = tpu.matmul %8, %24, %cst_24 {dimension_numbers = #tpu.dot_dimension_numbers<[1], [0], [0], [1], [0, 0, 1, 1], [], []>} : vector<16x32xbf16>, vector<32x8xbf16>, vector<16x8xf32> -> vector<16x8xf32>
    %c0_25 = arith.constant 0 : index
    %c0_26 = arith.constant 0 : index
    %c0_27 = arith.constant 0 : index
    %26 = vector.load %arg11[%c0_25, %c0_26, %c0_27] : memref<1x1x8xf32, #tpu.memory_space<vmem>>, vector<1x1x8xf32>
    %27 = vector.shape_cast %26 : vector<1x1x8xf32> to vector<1x8xf32>
    %28 = vector.broadcast %27 : vector<1x8xf32> to vector<16x8xf32>
    %29 = arith.addf %25, %28 : vector<16x8xf32>
    %30 = arith.truncf %15 : vector<8x8xf32> to vector<8x8xbf16>
    %31 = arith.truncf %22 : vector<16x8xf32> to vector<16x8xbf16>
    %cst_28 = arith.constant dense<0.000000e+00> : vector<8x16xf32>
    %32 = tpu.matmul %30, %31, %cst_28 {dimension_numbers = #tpu.dot_dimension_numbers<[1], [1], [0], [0], [0, 0, 1, 0], [], []>} : vector<8x8xbf16>, vector<16x8xbf16>, vector<8x16xf32> -> vector<8x16xf32>
    %cst_29 = arith.constant dense<0xFF800000> : vector<8xf32>
    %33 = vector.multi_reduction <maximumf>, %32, %cst_29 [1] : vector<8x16xf32> to vector<8xf32>
    %34 = vector.shape_cast %33 : vector<8xf32> to vector<8x1xf32>
    %35 = vector.broadcast %34 : vector<8x1xf32> to vector<8x16xf32>
    %36 = arith.subf %32, %35 : vector<8x16xf32>
    %37 = math.exp %36 : vector<8x16xf32>
    %cst_30 = arith.constant dense<0.000000e+00> : vector<8xf32>
    %38 = vector.multi_reduction <add>, %37, %cst_30 [1] : vector<8x16xf32> to vector<8xf32>
    %39 = vector.shape_cast %38 : vector<8xf32> to vector<8x1xf32>
    %40 = tpu.reciprocal %39 : vector<8x1xf32> -> vector<8x1xf32>
    %41 = vector.broadcast %40 : vector<8x1xf32> to vector<8x16xf32>
    %42 = arith.mulf %37, %41 : vector<8x16xf32>
    %c0_31 = arith.constant 0 : index
    %c0_32 = arith.constant 0 : index
    %c0_33 = arith.constant 0 : index
    %c0_34 = arith.constant 0 : index
    %43 = vector.load %arg15[%c0_31, %c0_32, %c0_33, %c0_34] : memref<1x1x8x16xf32, #tpu.memory_space<vmem>>, vector<1x1x8x16xf32>
    %44 = vector.shape_cast %43 : vector<1x1x8x16xf32> to vector<8x16xf32>
    %45 = vector.shape_cast %42 : vector<8x16xf32> to vector<1x1x8x16xf32>
    tpu.vector_store %arg15[%c0_31, %c0_32, %c0_33, %c0_34], %45 {strides = array<i32>} : memref<1x1x8x16xf32, #tpu.memory_space<vmem>>, vector<1x1x8x16xf32>,
    %46 = arith.truncf %42 : vector<8x16xf32> to vector<8x16xbf16>
    %47 = arith.truncf %29 : vector<16x8xf32> to vector<16x8xbf16>
    %cst_35 = arith.constant dense<0.000000e+00> : vector<8x8xf32>
    %48 = tpu.matmul %46, %47, %cst_35 {dimension_numbers = #tpu.dot_dimension_numbers<[1], [0], [0], [1], [0, 0, 1, 1], [], []>} : vector<8x16xbf16>, vector<16x8xbf16>, vector<8x8xf32> -> vector<8x8xf32>
    %49 = arith.truncf %48 : vector<8x8xf32> to vector<8x8xbf16>
    %c0_36 = arith.constant 0 : index
    %c0_37 = arith.constant 0 : index
    %c0_38 = arith.constant 0 : index
    %50 = vector.load %arg12[%c0_36, %c0_37, %c0_38] : memref<1x8x32xbf16, #tpu.memory_space<vmem>>, vector<1x8x32xbf16>
    %51 = vector.shape_cast %50 : vector<1x8x32xbf16> to vector<8x32xbf16>
    %cst_39 = arith.constant dense<0.000000e+00> : vector<8x32xf32>
    %52 = tpu.matmul %49, %51, %cst_39 {dimension_numbers = #tpu.dot_dimension_numbers<[1], [0], [0], [1], [0, 0, 1, 1], [], []>} : vector<8x8xbf16>, vector<8x32xbf16>, vector<8x32xf32> -> vector<8x32xf32>
    %c0_i32 = arith.constant 0 : i32
    %53 = arith.cmpi eq, %arg2, %c0_i32 : i32
    %54 = arith.extui %53 : i1 to i32
    %c0_i32_40 = arith.constant 0 : i32
    %55 = arith.cmpi ne, %54, %c0_i32_40 : i32
    scf.if %55 {
      %c0_43 = arith.constant 0 : index
      %c0_44 = arith.constant 0 : index
      %59 = vector.load %arg13[%c0_43, %c0_44] : memref<1x32xf32, #tpu.memory_space<vmem>>, vector<1x32xf32>
      %60 = vector.broadcast %59 : vector<1x32xf32> to vector<8x32xf32>
      %61 = arith.addf %52, %60 : vector<8x32xf32>
      %c0_45 = arith.constant 0 : index
      %c0_46 = arith.constant 0 : index
      %c0_47 = arith.constant 0 : index
      %62 = vector.load %arg14[%c0_45, %c0_46, %c0_47] : memref<1x8x32xf32, #tpu.memory_space<vmem>>, vector<1x8x32xf32>
      %63 = vector.shape_cast %62 : vector<1x8x32xf32> to vector<8x32xf32>
      %64 = vector.shape_cast %61 : vector<8x32xf32> to vector<1x8x32xf32>
      tpu.vector_store %arg14[%c0_45, %c0_46, %c0_47], %64 {strides = array<i32>} : memref<1x8x32xf32, #tpu.memory_space<vmem>>, vector<1x8x32xf32>,
    } else {
    }
    %c0_i32_41 = arith.constant 0 : i32
    %56 = arith.cmpi sgt, %arg2, %c0_i32_41 : i32
    %57 = arith.extui %56 : i1 to i32
    %c0_i32_42 = arith.constant 0 : i32
    %58 = arith.cmpi ne, %57, %c0_i32_42 : i32
    scf.if %58 {
      %c0_43 = arith.constant 0 : index
      %c0_44 = arith.constant 0 : index
      %c0_45 = arith.constant 0 : index
      %59 = vector.load %arg14[%c0_43, %c0_44, %c0_45] : memref<1x8x32xf32, #tpu.memory_space<vmem>>, vector<1x8x32xf32>
      %60 = vector.shape_cast %59 : vector<1x8x32xf32> to vector<8x32xf32>
      %61 = arith.addf %60, %52 : vector<8x32xf32>
      %c0_46 = arith.constant 0 : index
      %c0_47 = arith.constant 0 : index
      %c0_48 = arith.constant 0 : index
      %62 = vector.load %arg14[%c0_46, %c0_47, %c0_48] : memref<1x8x32xf32, #tpu.memory_space<vmem>>, vector<1x8x32xf32>
      %63 = vector.shape_cast %62 : vector<1x8x32xf32> to vector<8x32xf32>
      %64 = vector.shape_cast %61 : vector<8x32xf32> to vector<1x8x32xf32>
      tpu.vector_store %arg14[%c0_46, %c0_47, %c0_48], %64 {strides = array<i32>} : memref<1x8x32xf32, #tpu.memory_space<vmem>>, vector<1x8x32xf32>,
    } else {
    }
    return
  }
  func.func @transform_0(%arg0: i32, %arg1: i32, %arg2: i32) -> (i32, i32, i32) {
    %c0_i32 = arith.constant 0 : i32
    %c0_i32_0 = arith.constant 0 : i32
    return %arg0, %arg1, %c0_i32 : i32, i32, i32
  }
  func.func @transform_1(%arg0: i32, %arg1: i32, %arg2: i32) -> (i32, i32, i32) {
    %c0_i32 = arith.constant 0 : i32
    %c0_i32_0 = arith.constant 0 : i32
    %c0_i32_1 = arith.constant 0 : i32
    return %arg0, %c0_i32, %c0_i32_0 : i32, i32, i32
  }
  func.func @transform_2(%arg0: i32, %arg1: i32, %arg2: i32) -> (i32, i32, i32) {
    %c0_i32 = arith.constant 0 : i32
    %c0_i32_0 = arith.constant 0 : i32
    %c0_i32_1 = arith.constant 0 : i32
    return %arg0, %c0_i32, %c0_i32_0 : i32, i32, i32
  }
  func.func @transform_3(%arg0: i32, %arg1: i32, %arg2: i32) -> (i32, i32, i32) {
    %c0_i32 = arith.constant 0 : i32
    %c0_i32_0 = arith.constant 0 : i32
    %c0_i32_1 = arith.constant 0 : i32
    return %arg2, %c0_i32, %c0_i32_0 : i32, i32, i32
  }
  func.func @transform_4(%arg0: i32, %arg1: i32, %arg2: i32) -> (i32, i32, i32) {
    %c0_i32 = arith.constant 0 : i32
    %c0_i32_0 = arith.constant 0 : i32
    %c0_i32_1 = arith.constant 0 : i32
    return %arg2, %c0_i32, %c0_i32_0 : i32, i32, i32
  }
  func.func @transform_5(%arg0: i32, %arg1: i32, %arg2: i32) -> (i32, i32, i32) {
    %c0_i32 = arith.constant 0 : i32
    %c0_i32_0 = arith.constant 0 : i32
    %c0_i32_1 = arith.constant 0 : i32
    return %arg2, %c0_i32, %c0_i32_0 : i32, i32, i32
  }
  func.func @transform_6(%arg0: i32, %arg1: i32, %arg2: i32) -> (i32, i32, i32) {
    %c0_i32 = arith.constant 0 : i32
    %c0_i32_0 = arith.constant 0 : i32
    %c0_i32_1 = arith.constant 0 : i32
    return %arg2, %c0_i32, %c0_i32_0 : i32, i32, i32
  }
  func.func @transform_7(%arg0: i32, %arg1: i32, %arg2: i32) -> (i32, i32, i32) {
    %c0_i32 = arith.constant 0 : i32
    %c0_i32_0 = arith.constant 0 : i32
    %c0_i32_1 = arith.constant 0 : i32
    return %arg2, %c0_i32, %c0_i32_0 : i32, i32, i32
  }
  func.func @transform_8(%arg0: i32, %arg1: i32, %arg2: i32) -> (i32, i32, i32) {
    %c0_i32 = arith.constant 0 : i32
    %c0_i32_0 = arith.constant 0 : i32
    %c0_i32_1 = arith.constant 0 : i32
    return %arg2, %c0_i32, %c0_i32_0 : i32, i32, i32
  }
  func.func @transform_9(%arg0: i32, %arg1: i32, %arg2: i32) -> (i32, i32, i32) {
    %c0_i32 = arith.constant 0 : i32
    %c0_i32_0 = arith.constant 0 : i32
    %c0_i32_1 = arith.constant 0 : i32
    return %arg2, %c0_i32, %c0_i32_0 : i32, i32, i32
  }
  func.func @transform_10(%arg0: i32, %arg1: i32, %arg2: i32) -> (i32, i32) {
    %c0_i32 = arith.constant 0 : i32
    %c0_i32_0 = arith.constant 0 : i32
    %c0_i32_1 = arith.constant 0 : i32
    return %c0_i32, %c0_i32_0 : i32, i32
  }
  func.func @transform_11(%arg0: i32, %arg1: i32, %arg2: i32) -> (i32, i32, i32) {
    %c0_i32 = arith.constant 0 : i32
    %c0_i32_0 = arith.constant 0 : i32
    return %arg0, %arg1, %c0_i32 : i32, i32, i32
  }
  func.func @transform_12(%arg0: i32, %arg1: i32, %arg2: i32) -> (i32, i32, i32, i32) {
    %c0_i32 = arith.constant 0 : i32
    %c0_i32_0 = arith.constant 0 : i32
    return %arg0, %arg2, %arg1, %c0_i32 : i32, i32, i32, i32
  }
}

</mosaic_0001>

<bundles_post_ra>
// kernel: tpu_custom_call.1
= control target key start
LH: loop header
LB: loop body
LE: loop exit
PB: predicated region body
PF: predicated region fallthrough
CT: control target
= control target key end

     0   :  { %s1763_s0 = inlined_call_operand.vmem [shape: f32[2,8,32], index: 0, kind: input, shape index: {}]   ;;  %s1764_s1 = inlined_call_operand.vmem [shape: f32[2,16,32], index: 1, kind: input, shape index: {}]   ;;  %s1765_s2 = inlined_call_operand.vmem [shape: f32[2,16,32], index: 2, kind: input, shape index: {}]   ;;  %s1766_s3 = inlined_call_operand.vmem [shape: bf16[4,32,8], index: 3, kind: input, shape index: {}]   ;;  %s1767_s4 = inlined_call_operand.vmem [shape: f32[4,1,8], index: 4, kind: input, shape index: {}]   ;;  %s1768_s5 = inlined_call_operand.vmem [shape: bf16[4,32,8], index: 5, kind: input, shape index: {}]   ;;  %s1769_s6 = inlined_call_operand.vmem [shape: f32[4,1,8], index: 6, kind: input, shape index: {}]   ;;  %s1770_s7 = inlined_call_operand.vmem [shape: bf16[4,32,8], index: 7, kind: input, shape index: {}]   ;;  %s1771_s8 = inlined_call_operand.vmem [shape: f32[4,1,8], index: 8, kind: input, shape index: {}]   ;;  %s1772_s9 = inlined_call_operand.vmem [shape: bf16[4,8,32], index: 9, kind: input, shape index: {}]   ;;  %s1773_s10 = inlined_call_operand.vmem [shape: f32[1,32], index: 10, kind: input, shape index: {}]   ;;  %s1774_s11 = inlined_call_operand.hbm [shape: f32[2,8,32], index: 11, kind: output, shape index: {0}]   ;;  %s1775_s12 = inlined_call_operand.hbm [shape: f32[2,4,8,16], index: 12, kind: output, shape index: {1}]  }
   0x1   :  { %1795 = sst [smem:[#allocation22_spill]] %s1763_s0 }
   0x2   :  { %1796 = sst [smem:[#allocation23_spill]] %s1764_s1 }
   0x3   :  { %1797 = sst [smem:[#allocation24_spill]] %s1768_s5 }
   0x4   :  { %1798 = sst [smem:[#allocation25_spill]] %s1772_s9 }
   0x5   :  { %1799 = sst [smem:[#allocation26_spill]] %s1773_s10 }
   0x6   :  { %1800 = sst [smem:[#allocation27_spill]] %s1774_s11 }
   0x7   :  { %1801 = sst [smem:[#allocation28_spill]] %s1775_s12 }
   0x8   :  { %18 = vsyncpa [#allocation3], 0 }
   0x9   :  { %20 = vsyncpa [#allocation3 + $0x1], 0 }
   0xa   :  { %21 = vsyncpa [#allocation5], 0 }
   0xb   :  { %23 = vsyncpa [#allocation5 + $0x1], 0  ;;  %s1485_s21 = smov 0   ;;  %s1487_s22 = smov 0  }
   0xc   :  { %s1489_s23 = smov 0   ;;  %s1491_s24 = smov 0  }
   0xd   :  { %s1493_s25 = smov 0   ;;  %s1495_s26 = smov 0  }
   0xe   :  { %s1497_s27 = smov 0   ;;  %s1499_s28 = smov 0  }
   0xf   :  { %s1501_s29 = smov 0   ;;  %s1503_s30 = smov 0  }
  0x10   :  { %s1505_s13 = smov 0  }
  0x11 LB: > { %1802 = sst [smem:[#allocation8_spill]] %s1378_s21  ;;  %s1091_s14 = sadd.s32 4294967295, %s1418_s13   ;;  %s1418_s13 = sphi %s1505_s13, %s29_s13   ;;  %s1414_s30 = sphi %s1503_s30, %s1847_s30   ;;  %s1410_s29 = sphi %s1501_s29, %s1854_s29   ;;  %s1406_s28 = sphi %s1499_s28, %s1845_s28   ;;  %s1402_s27 = sphi %s1497_s27, %s1844_s27   ;;  %s1398_s26 = sphi %s1495_s26, %s1853_s26   ;;  %s1394_s25 = sphi %s1493_s25, %s1852_s25   ;;  %s1390_s24 = sphi %s1491_s24, %s1851_s24   ;;  %s1386_s23 = sphi %s1489_s23, %s1850_s23   ;;  %s1382_s22 = sphi %s1487_s22, %s1849_s22   ;;  %s1378_s21 = sphi %s1485_s21, %s1848_s21  }
  0x12   : > { %1803 = sst [smem:[#allocation9_spill]] %s1386_s23  ;;  %s1092_s15 = sadd.s32 4294967294, %s1418_s13  }
  0x13   : > { %1804 = sst [smem:[#allocation10_spill]] %s1390_s24  ;;  %s41_s16 = sadd.s32 1, %s1410_s29 }
  0x14   : > { %1805 = sst [smem:[#allocation11_spill]] %s1398_s26  ;;  %s48_s17 = sadd.s32 1, %s1414_s30 }
  0x15   : > { %1806 = sst [smem:[#allocation12_spill]] %s1410_s29  ;;  %p42_p0 = scmp.ge.s32.totalorder %s41_s16, 4 }
  0x16   : > { %1807 = sst [smem:[#allocation13_spill]] %s1414_s30  ;;  %s340_s18 = sadd.s32 1, %s1398_s26 }
  0x17   : > { %1808 = sst [smem:[#allocation14_spill]] %s1418_s13  ;;  %p350_p1 = scmp.ne.s32.totalorder %s1398_s26, %s1394_s25 }
  0x18   : > { %p1547_p2 = scmp.eq.s32.totalorder %s1091_s14, 7  ;;  %s1856_s16 = smov (%p42_p0, %s41_s16), 0 }
  0x19   : > { %1810 = sst [smem:[#allocation15_spill]] %s1856_s16  ;;  %s1858_s17 = smov (!%p42_p0, %s48_s17), %s1414_s30 }
  0x1a   : > { %p1556_p3 = por %p1547_p2, %p350_p1  ;;  %p356_p4 = scmp.ne.s32.totalorder %s1394_s25, %s1390_s24 }
  0x1b   : > { %p50_p5 = scmp.ge.s32.totalorder %s1858_s17, 2  ;;  %p1562_p6 = scmp.eq.s32.totalorder %s1092_s15, 7 }
  0x1c   : > { %s1811_s20 = scalar_select %p1556_p3, 1, 0 }
  0x1d   : > { %s364_s12 = ssub.s32 %s1410_s29, %s1856_s16  ;;  %s370_s11 = sadd.s32 1, %s1386_s23 }
  0x1e   : > { %1812 = sst [smem:[#allocation16_spill]] %s1811_s20  ;;  %s1860_s17 = smov (%p50_p5, %s1858_s17), 0 }
  0x1f   : > { %1814 = sst [smem:[#allocation17_spill]] %s1860_s17  ;;  %p1573_p7 = por %p1562_p6, %p356_p4 }
  0x20   : > { %p380_p8 = scmp.ne.s32.totalorder %s1386_s23, %s1382_s22  ;;  %s335_s24 = ssub.s32 %s1414_s30, %s1860_s17 }
  0x21   : > { %s1815_s10 = scalar_select %p1573_p7, 1, 0 }
  0x22   : > { %p386_p9 = scmp.ne.s32.totalorder %s1382_s22, %s1378_s21  ;;  %p338_p10 = scmp.eq.s32.totalorder %s335_s24, 0 }
  0x23   : > { %1816 = sst [smem:[#allocation18_spill]] %s1815_s10  ;;  %s365_s15 = sor.u32 %s364_s12, %s335_s24 }
  0x24   : > { %p368_p11 = scmp.eq.s32.totalorder %s365_s15, 0  ;;  %p1585_p12 = por %p380_p8, %p1547_p2 }
  0x25   : > { %s1590_s16 = scalar_select %p338_p10, %s1398_s26, %s340_s18  }
  0x26   : > { %s1593_s29 = scalar_select %p368_p11, %s1386_s23, %s370_s11  }
  0x27   : > { %1818 = sst [smem:[#allocation19_spill]] %s1590_s16  ;;  %p1597_p13 = por %p386_p9, %p1562_p6 }
  0x28   : > { %1819 = sst [smem:[#allocation20_spill]] %s1593_s29  ;;  %p1095_p0 = scmp.ge.s32.totalorder %s1418_s13, 1 }
  0x29   : > { %s1820_s9 = scalar_select %p1597_p13, 1, 0 }
  0x2a   : > { %p483_p1 = scmp.lt.s32.totalorder %s1418_s13, 9 }
  0x2b   : > { %1821 = sst [smem:[#allocation21_spill]] %s1820_s9 }
  0x2c   : > { %p484_p4 = pnand %p1095_p0, %p483_p1 }
  0x2d   : > { %p587_p2 = scmp.lt.s32.totalorder (!%p484_p4), %s1402_s27, 3  ;;  %p570_p5 = scmp.lt.s32.totalorder (!%p484_p4), %s1406_s28, 1 }
  0x2e   : > { %487 = sbr.rel (%p484_p4) target bundleno = 926 (0x39e), region = 64  ;;  %s1790_s12 = sand.u32 (!%p484_p4), 1, %s1394_s25  }
  0x2f   : > { %s1617_s19 = sshll.u32 (!%p484_p4), %s1790_s12, 3  ;;  %s1822_s5 = sld [smem:[#allocation24_spill]] (!%p484_p4) }
  0x30   : > { %s1823_s1 = sld [smem:[#allocation23_spill]] (!%p484_p4)  ;;  %s1793_s23 = sand.u32 (!%p484_p4), 1, %s1382_s22  }
  0x31   : > { %s1824_s0 = sld [smem:[#allocation22_spill]] (!%p484_p4)  ;;  %p1140_p6 = scmp.ne.s32.totalorder (!%p484_p4), %s1402_s27, 0 }
  0x33   : > { %s1607_s11 = scalar_select %p587_p2, %s1402_s27, 3  ;;  %vm644_vm0 = vcmask 261120   ;;  %vm737_vm1 = vcmask 64512   ;;  %vm757_vm2 = vcmask 130048   ;;  %vm806_vm3 = vcmask 1043456  }
  0x34   : > { %s1610_s24 = scalar_select %p570_p5, %s1406_s28, 1 }
  0x35   : > { %s1613_s18 = sshll.u32 %s1607_s11, 4  ;;  %s602_s26 = scalar_lea.vmem %s1769_s6, %s1607_s11 }
  0x36   : > { %s599_s17 = scalar_lea.vmem %s1822_s5, %s1613_s18  ;;  %s1149_s30 = sshll.u32 %s1610_s24, 4  ;;  %v1260_v11 = vld [vmem:[%s602_s26] ss:$0 sm:$0xff] }
  0x37   : > { %v1157_v0 = vld [vmem:[%s599_s17 + $0x8] sm:$0xff]  ;;  %s581_s29 = scalar_lea.vmem %s1823_s1, %s1149_s30  ;;  %v1156_v1 = vld [vmem:[%s599_s17] sm:$0xff]  ;;  %s591_s21 = scalar_lea.vmem %s1766_s3, %s1613_s18 }
  0x38   : > { %s1098_s10 = sshll.u32 %s1610_s24, 3  ;;  %690 = vmatpush.bf16.msra.mxu1 %v1157_v0  ;;  %v618_v2 = vld [vmem:[%s581_s29] sm:$0xff]  ;;  %v619_v3 = vld [vmem:[%s581_s29 + $0x8] sm:$0xff]  ;;  %s594_s29 = scalar_lea.vmem %s1767_s4, %s1607_s11 }
  0x39   : > { %v1155_v4 = vld [vmem:[%s591_s21 + $0x8] sm:$0xff]  ;;  %s576_s12 = scalar_lea.vmem %s1824_s0, %s1098_s10  ;;  %v1154_v5 = vld [vmem:[%s591_s21] sm:$0xff]  ;;  %v620_v7 = vpack.c.bf16 %v619_v3, %v618_v2  ;;  %s607_s21 = scalar_lea.vmem %s1770_s7, %s1613_s18 }
  0x3a   : > { %654 = vmatpush.bf16.msra.mxu0 %v1155_v4  ;;  %v616_v6 = vld [vmem:[%s576_s12] sm:$0xff]  ;;  %s586_s17 = scalar_lea.vmem %s1765_s2, %s1149_s30  ;;  %v1159_v21 = vld [vmem:[%s607_s21 + $0x8] sm:$0xff]  ;;  %s610_s18 = scalar_lea.vmem %s1771_s8, %s1607_s11 }
  0x3b   : > { %v617_v8 = vpack.c.bf16 %v616_v6, %v616_v6  ;;  %v1261_v14 = vld [vmem:[%s594_s29] ss:$0 sm:$0xff]  ;;  %727 = vmatpush.bf16.msra.mxu2 %v1159_v21  ;;  %v622_v24 = vld [vmem:[%s586_s17 + $0x8] sm:$0xff]  ;;  %s1109_s30 = sshll.u32 %s1607_s11, 2  ;;  %s1825_s26 = sld [smem:[#allocation25_spill]] }
  0x3c   : > { %691 = vmatpush.bf16.msra.mxu1 %v1156_v1  ;;  %v1158_v22 = vld [vmem:[%s607_s21] sm:$0xff]  ;;  %s1672_s11 = sshll.u32 %s1793_s23, 3  ;;  %s562_s5 = scalar_lea.vmem [#allocation2], %s1617_s19 }
  0x3d   : > { %v621_v23 = vld [vmem:[%s586_s17] sm:$0xff]  ;;  %s1794_s29 = scalar_lea.vmem [#allocation4], %s1672_s11  ;;  %s1826_s13 = sld [smem:[#allocation26_spill]] (!%p1140_p6) }
  0x3e   : > { %655 = vmatpush.bf16.msra.mxu0 %v1154_v5  ;;  %v623_v25 = vpack.c.bf16 %v622_v24, %v621_v23  ;;  %v1262_v32 = vld [vmem:[%s610_s18] ss:$0 sm:$0xff] }
  0x3f   : > { %1127 = vmatmul.msk.bf16.vlgmr.msra.gmra.mxu1 %vm644_vm0, %v620_v7  ;;  %728 = vmatpush.bf16.msra.mxu2 %v1158_v22 }
  0x41   : > { %1118 = vmatmul.msk.bf16.vlgmr.msra.gmra.mxu0 %vm644_vm0, %v617_v8  ;;  %s614_s9 = scalar_lea.vmem %s1825_s26, %s1109_s30 }
  0x42   : > { %1136 = vmatmul.msk.bf16.vlgmr.msra.gmra.mxu2 %vm644_vm0, %v623_v25  ;;  %v802_v40 = vld [vmem:[%s614_s9] sm:$0xf] }
  0x43   : > { %v808_v41 = vsel %vm806_vm3, %v802_v40, 0 }
  0x44   : > { %817 = vmatpush.bf16.msrb.mxu1 %v808_v41 }
  0xbc   : > { %v693_v9 = vpop.f32.mrf.mxu1 }
  0xbd   : > { %v694_v13 = vadd.f32 %v1260_v11, %v693_v9 }
  0xbe   : > { %v657_v10 = vpop.f32.mrf.mxu0 }
  0xbf   : > { %v658_v18 = vadd.f32 %v1261_v14, %v657_v10 }
  0xc1   : > { %v735_v20 = vpack.c.bf16 %v658_v18, %v658_v18 }
  0xc4   : > { %v695_v12 = vpop.f32.mrf.mxu1 }
  0xc5   : > { %v696_v15 = vadd.f32 %v1260_v11, %v695_v12  ;;  %v730_v29 = vpop.f32.mrf.mxu2 }
  0xc6   : > { %v659_v16 = vpop.f32.mrf.mxu0  ;;  %v731_v34 = vadd.f32 %v1262_v32, %v730_v29 }
  0xc7   : > { %v736_v17 = vpack.c.bf16 %v696_v15, %v694_v13 }
  0xc9   : > { %v742_v19 = vsel %vm737_vm1, %v736_v17, 0 }
  0xca   : > { %751 = vmatpush.bf16.xpose.msra.mxu3 %v742_v19 }
  0xcd   : > { %v732_v35 = vpop.f32.mrf.mxu2 }
  0xce   : > { %v733_v36 = vadd.f32 %v1262_v32, %v732_v35 }
  0xd0   : > { %v784_v37 = vpack.c.bf16 %v733_v36, %v731_v34 }
  0xd1   : > { %1137 = vmatmul.msk.bf16.vlgmr.msra.gmra.mxu3 %vm737_vm1, %v735_v20 }
  0xd2   : > { %795 = vmatpush.bf16.msrb.mxu0 %v784_v37 }
 0x154   : > { %v753_v26 = vpop.f32.mrf.mxu3 }
 0x155   : > { %v758_v27 = vsel %vm757_vm2, %v753_v26, -inf }
 0x156   : > { %759 = vmax.xlane.f32.xlu0 %v758_v27 }
 0x15c   : > { %v755_v28 = vpop.f32.mrf.mxu3 }
 0x1c9   : > { %v760_v30 = vpop.xlane.xlu0 %759 }
 0x1ca   : > { %v761_v31 = vsub.f32 %v753_v26, %v760_v30 }
 0x1cc   : > { %v762_v33 = vmul.f32 1.442695, %v761_v31 }
 0x1ce   : > { %1263 = vpow2.f32 %v762_v33 }
 0x1d4   : > { %v1264_v38 = vpop.eup %1263 }
 0x1d5   : > { %v764_v39 = vsel %vm757_vm2, %v1264_v38, 0.0 }
 0x1d6   : > { %765 = vadd.xlane.f32.xlu0 %v764_v39 }
 0x249   : > { %v766_v42 = vpop.xlane.xlu0 %765 }
 0x24a   : > { %1265 = vrcp.f32 %v766_v42  ;;  %v778_v46 = vand.u32 2147483648, %v766_v42  ;;  %v776_v48 = vand.u32 2147483647, %v766_v42  ;;  %vm772_vm5 = vweird.f32 %v766_v42 }
 0x24c   : > { %v779_v50 = vor.u32 1.1754944e-38, %v778_v46  ;;  %vm777_vm7 = vcmp.eq.f32.partialorder %v776_v48, 8.507059e+37 }
 0x250   : > { %v1266_v43 = vpop.eup %1265 }
 0x251   : > { %v768_v44 = vmul.f32 %v1266_v43, %v766_v42  ;;  %vm773_vm4 = vweird.f32 %v1266_v43 }
 0x252   : > { %vm774_vm6 = vmor %vm772_vm5, %vm773_vm4 }
 0x253   : > { %v769_v45 = vsub.f32 1.0, %v768_v44 }
 0x255   : > { %v770_v47 = vmul.f32 %v1266_v43, %v769_v45 }
 0x257   : > { %v771_v49 = vadd.f32 %v1266_v43, %v770_v47 }
 0x259   : > { %v775_v51 = vsel %vm774_vm6, %v1266_v43, %v771_v49 }
 0x25a   : > { %v780_v52 = vsel %vm777_vm7, %v779_v50, %v775_v51 }
 0x25b   : > { %v781_v53 = vmul.f32 %v1264_v38, %v780_v52 }
 0x25d   : > { %782 = vst.msk [vmem:[%s1794_s29] sm:$0xff] %vm757_vm2, %v781_v53  ;;  %v783_v54 = vpack.c.bf16 %v781_v53, %v781_v53 }
 0x25f   : > { %1138 = vmatmul.msk.bf16.vlgmr.msrb.gmra.mxu0 %vm757_vm2, %v783_v54 }
 0x2dc   : > { %v797_v55 = vpop.f32.mrf.mxu0 }
 0x2dd   : > { %v801_v56 = vpack.c.bf16 %v797_v55, %v797_v55 }
 0x2df   : > { %1139 = vmatmul.msk.bf16.vlgmr.msrb.gmra.mxu1 %vm737_vm1, %v801_v56 }
 0x2e4   : > { %v799_v57 = vpop.f32.mrf.mxu0 }
 0x35c   : > { %v819_v58 = vpop.f32.mrf.mxu1 }
 0x360   : > { %826 = sbr.rel (%p1140_p6) target bundleno = 873 (0x369), region = 68 }
 0x364   : > { %v821_v59 = vpop.f32.mrf.mxu1 }
 0x365   : > { %v1267_v60 = vld [vmem:[%s1826_s13] ss:$0 sm:$0xff] }
 0x366   : > { %v831_v61 = vadd.f32 %v1267_v60, %v819_v58 }
 0x368   : > { %832 = vst.msk [vmem:[%s562_s5] sm:$0xff] %vm644_vm0, %v831_v61 }
 0x369 PF: > { %p1141_p8 = scmp.le.s32.totalorder %s1402_s27, 0 }
 0x36b   : > { %836 = sbr.rel (%p1141_p8) target bundleno = 884 (0x374), region = 72 }
 0x370   : > { %v837_v62 = vld [vmem:[%s562_s5] sm:$0xff] }
 0x371   : > { %v838_v63 = vadd.f32 %v837_v62, %v819_v58 }
 0x373   : > { %839 = vst.msk [vmem:[%s562_s5] sm:$0xff] %vm644_vm0, %v838_v63 }
 0x374 PF: > { %s1144_s16 = sshll.u32 %s1406_s28, 3  ;;  %s1828_s24 = sld [smem:[#allocation27_spill]] }
 0x375   : > { %s859_s14 = sshll.u32 %s562_s5, 4  ;;  %s1830_s26 = sand.u32 1, %s1394_s25   ;;  %s860_s14 = int_to_ptr.vmem [resolvable:$true] %s859_s14 }
 0x376   : > { %s841_s9 = scalar_lea.sflag [#allocation3], %s1830_s26 }
 0x37a   : > { %s1829_s18 = smov %s1828_s24  ;;  %s857_s30 = scalar_lea.hbm %s1828_s24, %s1144_s16 }
 0x37b   : > { %s861_s15 = sshll.u32 %s857_s30, 4  ;;  %s1288_s29 = scalar_lea.hbm %s1829_s18, 16  ;;  %s862_s15 = int_to_ptr.hbm [resolvable:$true] %s861_s15 }
 0x37c   : > { %s1282_s10 = sshra.s32 %s862_s15, 4  ;;  %s1283_s10 = int_to_ptr.hbm [resolvable:$true] %s1282_s10 }
 0x37d   : > { %s1284_s21 = scalar_lea.hbm %s1283_s10, 8  ;;  %p1289_p0 = scmp.lt.s32.totalorder %s1283_s10, %s1829_s18 }
 0x37e   : > { %p1285_p9 = scmp.ne.s32.totalorder %s1283_s10, %s1284_s21  ;;  %p1290_p1 = scmp.lt.s32.totalorder %s1288_s29, %s1284_s21 }
 0x380   : > { %p1286_p10 = pnand %p1285_p9, %p1556_p3  ;;  %p1291_p4 = por %p1290_p1, %p1289_p0 }
 0x382   : > { %p1287_p11 = pneg %p1286_p10 }
 0x384   : > { %p1292_p2 = pnand %p1291_p4, %p1287_p11 }
 0x386   : > { %1295 = shalt.err (!%p1292_p2)
}
 0x387   : > { %1160 = dma.vmem_to_hbm [thread:$0]  (%p1556_p3), %s860_s14, 128, %s862_s15, %s841_s9  }
 0x388   : > { %s1145_s5 = sshll.u32 %s1406_s28, 2  ;;  %s1831_s16 = scalar_lea.vmem [#allocation4], %s1672_s11 }
 0x389   : > { %s876_s23 = sshll.u32 %s1831_s16, 4  ;;  %s872_s12 = sadd.s32 %s1402_s27, %s1145_s5  ;;  %s877_s23 = int_to_ptr.vmem [resolvable:$true] %s876_s23 }
 0x38a   : > { %s1146_s24 = sshll.u32 %s872_s12, 3  ;;  %s1832_s26 = sld [smem:[#allocation28_spill]] }
 0x38b   : > { %s1834_s13 = sand.u32 1, %s1382_s22  }
 0x38c   : > { %s846_s19 = scalar_lea.sflag [#allocation5], %s1834_s13 }
 0x390   : > { %s1833_s10 = smov %s1832_s26  ;;  %s874_s29 = scalar_lea.hbm %s1832_s26, %s1146_s24 }
 0x391   : > { %s878_s21 = sshll.u32 %s874_s29, 4  ;;  %s1316_s27 = scalar_lea.hbm %s1833_s10, 64  ;;  %s879_s21 = int_to_ptr.hbm [resolvable:$true] %s878_s21 }
 0x392   : > { %s1310_s17 = sshra.s32 %s879_s21, 4  ;;  %s1311_s17 = int_to_ptr.hbm [resolvable:$true] %s1310_s17 }
 0x393   : > { %s1312_s1 = scalar_lea.hbm %s1311_s17, 8  ;;  %p1317_p8 = scmp.lt.s32.totalorder %s1311_s17, %s1833_s10 }
 0x394   : > { %p1313_p5 = scmp.ne.s32.totalorder %s1311_s17, %s1312_s1  ;;  %p1318_p9 = scmp.lt.s32.totalorder %s1316_s27, %s1312_s1 }
 0x396   : > { %p1314_p3 = pnand %p1313_p5, %p1585_p12  ;;  %p1319_p10 = por %p1318_p9, %p1317_p8 }
 0x398   : > { %p1315_p6 = pneg %p1314_p3 }
 0x39a   : > { %p1320_p11 = pnand %p1319_p10, %p1315_p6 }
 0x39c   : > { %1323 = shalt.err (!%p1320_p11)
}
 0x39d   : > { %1161 = dma.vmem_to_hbm [thread:$0]  (%p1585_p12), %s877_s23, 128, %s879_s21, %s846_s19  }
 0x39e PF: > { %s1835_s9 = sld [smem:[#allocation14_spill]] }
 0x39f   : > { %s1836_s5 = sld [smem:[#allocation10_spill]] }
 0x3a4   : > { %p1171_p0 = scmp.ge.s32.totalorder %s1835_s9, 2 }
 0x3a5   : > { %s890_s12 = sand.u32 1, %s1836_s5  }
 0x3a6   : > { %p1165_p1 = pnand %p1171_p0, %p1573_p7  ;;  %s891_s24 = scalar_lea.sflag [#allocation3], %s890_s12 }
 0x3a8   : > { %p1166_p4 = pneg %p1165_p1 }
 0x3aa   : > { %1369 = dma.done.wait (%p1166_p4), %s891_s24, 128  }
 0x3ab   : > { %1371 = vsyncadd (%p1166_p4), %s891_s24, 4294967168  ;;  %s1838_s30 = sld [smem:[#allocation8_spill]]  ;;  %p1168_p2 = pnand %p1171_p0, %p1597_p13 }
 0x3ad   : > { %p1169_p5 = pneg %p1168_p2 }
 0x3b1   : > { %s900_s0 = sand.u32 1, %s1838_s30  }
 0x3b2   : > { %s901_s20 = scalar_lea.sflag [#allocation5], %s900_s0 }
 0x3b3   : > { %1373 = dma.done.wait (%p1169_p5), %s901_s20, 128  }
 0x3b4   : > { %1375 = vsyncadd (%p1169_p5), %s901_s20, 4294967168  ;;  %s29_s13 = sadd.s32 1, %s1835_s9   ;;  %s1840_s23 = sld [smem:[#allocation9_spill]] }
 0x3b5   : > { %p26_p12 = scmp.ge.s32.totalorder %s29_s13, 10   ;;  %s1841_s26 = sld [smem:[#allocation20_spill]] }
 0x3b6   : > { %s1842_s29 = sld [smem:[#allocation11_spill]]  ;;  %s1848_s21 = smov %s1382_s22 }
 0x3b7   : > { %s1843_s19 = sld [smem:[#allocation19_spill]]  ;;  %s1851_s24 = smov %s1394_s25 }
 0x3b8   : > { %s1844_s27 = sld [smem:[#allocation12_spill]] }
 0x3b9   : > { %s1845_s28 = sld [smem:[#allocation13_spill]] }
 0x3ba   : > { %s1846_s17 = sld [smem:[#allocation15_spill]]  ;;  %s1849_s22 = smov %s1840_s23 }
 0x3bb   : > { %s1847_s30 = sld [smem:[#allocation17_spill]]  ;;  %s1850_s23 = smov %s1841_s26 }
 0x3bc   : > { %s1852_s25 = smov %s1842_s29  ;;  %28 = sbr.rel (!%p26_p12) target bundleno = 17 (0x11), region = 151 }
 0x3bd   : > { %s1853_s26 = smov %s1843_s19 }
 0x3c0   : > { %s1854_s29 = smov %s1846_s17 }
 0x3c1   :  { %907 = vsyncpa [#allocation3], 1 }
 0x3c2   :  { %909 = vsyncpa [#allocation3 + $0x1], 1 }
 0x3c3   :  { %910 = vsyncpa [#allocation5], 1 }
 0x3c4   :  { %912 = vsyncpa [#allocation5 + $0x1], 1 }

</bundles_post_ra>
